<compile_context>
chip_gen: v6e
topology: v6e:2x2x1
jax: 0.10.0
libtpu: 0.0.40
codegen_flags: <defaults>
</compile_context>

<pallas_src>
import functools

import jax
import jax.numpy as jnp
from jax import lax
from jax.experimental import pallas as pl
from jax.experimental.pallas import tpu as pltpu


def _round_up(x, m):
    return ((x + m - 1) // m) * m


@functools.lru_cache(maxsize=None)
def _vmem_limit_bytes():
    """Generation-aware VMEM limit with ~25% headroom for double-buffers/scratch."""
    cap = 64 * 1024 * 1024  # conservative fallback (v7x per-TC VMEM)
    try:
        info = pltpu.get_tpu_info()
        cap = int(getattr(info, "vmem_capacity_bytes", cap))
    except Exception:
        pass
    return int(cap * 3 // 4)  # ~48 MiB on v7x, ~96 MiB on v5e/v6e


# ----------------------------------------------------------------------------
# Kernel A: row+column tiled (optional LayerNorm) + bf16 matmul + bias.
# Used for the hoisted LSTM input projection (use_norm=False) and the final
# LayerNorm + output projection (use_norm=True).
# ----------------------------------------------------------------------------
def _row_matmul_kernel(x_ref, gamma_ref, beta_ref, w_ref, b_ref, out_ref, *, use_norm):
    x = x_ref[...].astype(jnp.float32)
    if use_norm:
        mu = jnp.mean(x, axis=-1, keepdims=True)
        var = jnp.mean(jnp.square(x - mu), axis=-1, keepdims=True)
        x = (x - mu) * lax.rsqrt(var + 1e-5) * gamma_ref[...] + beta_ref[...]
    acc = jnp.dot(x.astype(jnp.bfloat16), w_ref[...],
                  preferred_element_type=jnp.float32)
    out_ref[...] = (acc + b_ref[...]).astype(out_ref.dtype)


def row_matmul(x2d, w_t, b_row, gamma=None, beta=None, use_norm=False,
               out_dtype=jnp.float32, tm_max=512, tn_max=512):
    """x2d: (rows, d) f32, w_t: (d, n_out) bf16, b_row: (1, n_out) f32."""
    rows, d = x2d.shape
    n_out = w_t.shape[1]
    if gamma is None:
        gamma = jnp.ones((1, d), jnp.float32)
    if beta is None:
        beta = jnp.zeros((1, d), jnp.float32)

    # Row tiling: pad rows up to the tile instead of a degenerate full-extent block.
    tm = min(tm_max, _round_up(rows, 8))
    rows_pad = _round_up(rows, tm)
    if rows_pad != rows:
        x2d = jnp.pad(x2d, ((0, rows_pad - rows), (0, 0)))

    # Column tiling (lane-dense: callers pad n_out to a multiple of 128).
    if n_out % 128 == 0:
        tn = min(tn_max, n_out)
        while n_out % tn:
            tn -= 128
    else:
        tn = n_out  # full-extent lane block (legal; callers should pad for perf)

    # TODO(synk): tile K (d) as well for very large d_model.
    grid = (rows_pad // tm, n_out // tn)
    out = pl.pallas_call(
        functools.partial(_row_matmul_kernel, use_norm=use_norm),
        out_shape=jax.ShapeDtypeStruct((rows_pad, n_out), out_dtype),
        grid_spec=pltpu.PrefetchScalarGridSpec(
            num_scalar_prefetch=0,
            grid=grid,
            in_specs=[
                pl.BlockSpec((tm, d), lambda r, c: (r, 0)),     # activations (row-tiled)
                pl.BlockSpec((1, d), lambda r, c: (0, 0)),      # gamma   (resident)
                pl.BlockSpec((1, d), lambda r, c: (0, 0)),      # beta    (resident)
                pl.BlockSpec((d, tn), lambda r, c: (0, c)),     # W^T     (column-tiled)
                pl.BlockSpec((1, tn), lambda r, c: (0, c)),     # bias    (column-tiled)
            ],
            out_specs=pl.BlockSpec((tm, tn), lambda r, c: (r, c)),
        ),
        compiler_params=pltpu.CompilerParams(
            dimension_semantics=("parallel", "parallel"),
            vmem_limit_bytes=_vmem_limit_bytes()),
    )(x2d, gamma, beta, w_t, b_row)
    return out[:rows] if rows_pad != rows else out


# ----------------------------------------------------------------------------
# Kernel B: time-chunked LSTM recurrence.
# gx = x @ W_ih + b is precomputed (bf16); only h @ W_hh happens per step.
# grid=(U_pad // T,) "arbitrary"; gx / per-step outputs streamed per chunk,
# W_hh / lengths / recurrent state resident.  h/c are fori_loop carries and are
# written back to the constant-index hT/cT output blocks once per chunk.
# ----------------------------------------------------------------------------
def _lstm_chunk_kernel(gx_ref, w_hh_ref, len_ref, h0_ref, c0_ref,
                       out_ref, hT_ref, cT_ref):
    T = gx_ref.shape[0]
    N, H = hT_ref.shape
    chunk = pl.program_id(0)

    @pl.when(chunk == 0)
    def _():
        hT_ref[...] = h0_ref[...]
        cT_ref[...] = c0_ref[...]

    w_hh = w_hh_ref[...]                                  # (H, 4H) bf16, loaded once
    len_b = jnp.broadcast_to(len_ref[...], (N, H))        # hoisted mask broadcast
    t0 = chunk * T

    def step(t, carry):
        h, c = carry
        gates = (gx_ref[t].astype(jnp.float32)
                 + jnp.dot(h.astype(jnp.bfloat16), w_hh,
                           preferred_element_type=jnp.float32))
        i = jax.nn.sigmoid(gates[:, 0 * H:1 * H])
        f = jax.nn.sigmoid(gates[:, 1 * H:2 * H])
        g = jnp.tanh(gates[:, 2 * H:3 * H])
        o = jax.nn.sigmoid(gates[:, 3 * H:4 * H])
        c_new = f * c + i * g
        h_new = o * jnp.tanh(c_new)
        valid = len_b > (t0 + t)                          # (N, H) bool
        out_ref[t] = jnp.where(valid, h_new, 0.0)
        return (jnp.where(valid, h_new, h), jnp.where(valid, c_new, c))

    h_fin, c_fin = lax.fori_loop(0, T, step, (hT_ref[...], cT_ref[...]))
    hT_ref[...] = h_fin
    cT_ref[...] = c_fin


def _pick_time_chunk(U, N, G, H):
    budget = _vmem_limit_bytes() // 4      # leave room for weights/state/double-buffers
    per_step = max(1, N * (2 * G + 4 * H))  # bf16 gx block + f32 out block per step
    t = max(1, min(64, budget // per_step))
    return min(t, max(1, _round_up(U, 8)))


def lstm_layer(gates_x, w_hh_t, length_col, h0, c0):
    """gates_x: (U_pad, N, 4H) bf16 precomputed x@W_ih+b; returns (out, hT, cT)."""
    U_pad, N, G = gates_x.shape
    H = G // 4
    T = gates_x.shape[0] if U_pad == 0 else None
    # chunk size is chosen by the caller via padding: U_pad is a multiple of it.
    # Recover it from the shapes (caller guarantees divisibility).
    # (Passed implicitly: the caller pads U to a multiple of its chunk.)
    raise_unused = T  # noqa: F841
    return _lstm_layer_impl(gates_x, w_hh_t, length_col, h0, c0)


def _lstm_layer_impl(gates_x, w_hh_t, length_col, h0, c0, chunk=None):
    U_pad, N, G = gates_x.shape
    H = G // 4
    T = chunk if chunk is not None else U_pad
    assert U_pad % T == 0
    n_chunks = U_pad // T
    out_shapes = (jax.ShapeDtypeStruct((U_pad, N, H), jnp.float32),
                  jax.ShapeDtypeStruct((N, H), jnp.float32),
                  jax.ShapeDtypeStruct((N, H), jnp.float32))
    grid_spec = pltpu.PrefetchScalarGridSpec(
        num_scalar_prefetch=0,
        grid=(n_chunks,),
        in_specs=[
            pl.BlockSpec((T, N, G), lambda c: (c, 0, 0)),   # gx chunk  (streamed, bf16)
            pl.BlockSpec((H, G), lambda c: (0, 0)),         # W_hh^T    (resident, bf16)
            pl.BlockSpec((N, 1), lambda c: (0, 0)),         # lengths   (resident)
            pl.BlockSpec((N, H), lambda c: (0, 0)),         # h0        (resident)
            pl.BlockSpec((N, H), lambda c: (0, 0)),         # c0        (resident)
        ],
        out_specs=[
            pl.BlockSpec((T, N, H), lambda c: (c, 0, 0)),   # per-step outputs
            pl.BlockSpec((N, H), lambda c: (0, 0)),         # final h (= resident state)
            pl.BlockSpec((N, H), lambda c: (0, 0)),         # final c (= resident state)
        ],
    )
    return pl.pallas_call(
        _lstm_chunk_kernel,
        out_shape=out_shapes,
        grid_spec=grid_spec,
        compiler_params=pltpu.CompilerParams(
            dimension_semantics=("arbitrary",),
            vmem_limit_bytes=_vmem_limit_bytes()),
    )(gates_x, w_hh_t, length_col, h0, c0)


# ----------------------------------------------------------------------------
# BasePredictor in JAX/Pallas
# ----------------------------------------------------------------------------
class BasePredictorPallas:
    def __init__(self, d_model, output_size, vocab_size, n_layers,
                 dropout=0.2, share_weight=False, use_norm=True, seed=0,
                 chunk_steps=None):
        self.d_model = d_model
        self.output_size = output_size
        self.vocab_size = vocab_size
        self.n_layers = n_layers
        self.use_norm = use_norm
        self.chunk_steps = chunk_steps
        # TODO(synk): inter-layer dropout (p=0.2) is an eval-mode no-op, not implemented.
        # TODO(synk): v7x dual-TensorCore batch sharding of the recurrence not implemented.
        # TODO(synk): on 128-MiB chips (v5e/v6e) the input projection could be fused
        # into the recurrence kernel to avoid materializing gx in HBM.

        key = jax.random.PRNGKey(seed)
        ks = jax.random.split(key, 4 * n_layers + 4)
        k_it = iter(ks)

        emb = 0.1 * jax.random.normal(next(k_it), (vocab_size, d_model), jnp.float32)
        self.embedding = emb.at[0].set(0.0)            # padding_idx=0

        self.w_ih_t, self.w_hh_t, self.b_gate = [], [], []
        for _ in range(n_layers):
            w_ih = 0.1 * jax.random.normal(next(k_it), (d_model, 4 * d_model), jnp.float32)
            w_hh = 0.1 * jax.random.normal(next(k_it), (d_model, 4 * d_model), jnp.float32)
            self.w_ih_t.append(w_ih.astype(jnp.bfloat16))
            self.w_hh_t.append(w_hh.astype(jnp.bfloat16))
            b_ih = 0.1 * jax.random.normal(next(k_it), (4 * d_model,), jnp.float32)
            b_hh = 0.1 * jax.random.normal(next(k_it), (4 * d_model,), jnp.float32)
            self.b_gate.append((b_ih + b_hh).reshape(1, 4 * d_model))

        w_out = 0.1 * jax.random.normal(next(k_it), (output_size, d_model), jnp.float32)
        b_out = 0.1 * jax.random.normal(next(k_it), (output_size,), jnp.float32)
        self.w_out_t = w_out.T                          # f32 (for reference / tying)
        self.b_out = b_out.reshape(1, output_size)

        # Lane-dense padded bf16 copies for the projection kernel (width -> mult of 128).
        v_pad = _round_up(output_size, 128)
        self.w_out_t_pad = (jnp.zeros((d_model, v_pad), jnp.bfloat16)
                            .at[:, :output_size].set(self.w_out_t.astype(jnp.bfloat16)))
        self.b_out_pad = jnp.zeros((1, v_pad), jnp.float32).at[:, :output_size].set(self.b_out)

        self.gamma = jnp.ones((1, d_model), jnp.float32)
        self.beta = jnp.zeros((1, d_model), jnp.float32)

        if share_weight:
            assert output_size == vocab_size
            # TODO(synk): with tied weights the padding_idx row is not re-zeroed
            # (matches aliasing nn.Embedding.weight to the projection weight).
            self.embedding = w_out

    def __call__(self, inputs, length=None, hidden=None):
        N, U = inputs.shape
        if length is None:
            assert N == U == 1
            length = jnp.array([1], dtype=jnp.int32)
        length_col = length.astype(jnp.int32).reshape(N, 1)

        D = self.d_model
        # Embedding gather directly in (U, N, D) layout: transpose the tiny int
        # token matrix, not the embedded float tensor.
        x = self.embedding[inputs.T].astype(jnp.float32)          # (U, N, D)

        # Time-chunk size & padding (mask handles the padded steps).
        if self.chunk_steps is not None:
            T = max(1, min(self.chunk_steps, U))
        else:
            T = _pick_time_chunk(U, N, 4 * D, D)
        U_pad = _round_up(U, T)
        if U_pad != U:
            x = jnp.pad(x, ((0, U_pad - U), (0, 0), (0, 0)))

        if hidden is None:
            h0 = jnp.zeros((self.n_layers, N, D), jnp.float32)
            c0 = jnp.zeros((self.n_layers, N, D), jnp.float32)
        else:
            h0, c0 = hidden

        layer_in = x
        hs, cs = [], []
        for l in range(self.n_layers):
            # Hoisted input projection: one (U_pad*N, D) @ (D, 4H) bf16 matmul.
            flat_in = layer_in.reshape(U_pad * N, D)
            gx = row_matmul(flat_in, self.w_ih_t[l], self.b_gate[l],
                            use_norm=False, out_dtype=jnp.bfloat16)
            gx = gx.reshape(U_pad, N, 4 * D)
            out, hT, cT = _lstm_layer_impl(gx, self.w_hh_t[l], length_col,
                                           h0[l], c0[l], chunk=T)
            hs.append(hT)
            cs.append(cT)
            layer_in = out

        flat = layer_in.reshape(U_pad * N, D)
        proj = row_matmul(flat, self.w_out_t_pad, self.b_out_pad,
                          gamma=self.gamma, beta=self.beta,
                          use_norm=self.use_norm, out_dtype=jnp.float32)
        outputs = proj.reshape(U_pad, N, -1)[:U, :, :self.output_size]
        return dict(out=outputs, hidden=(jnp.stack(hs), jnp.stack(cs)))


# ----------------------------------------------------------------------------
# Pure-JAX reference (lax.scan LSTM) emulating the kernels' bf16 matmul operands
# (f32 accumulation, f32 elementwise) for tight-tolerance validation.
# ----------------------------------------------------------------------------
def _bf16_mm(a, b):
    return jnp.dot(a.astype(jnp.bfloat16), b.astype(jnp.bfloat16),
                   preferred_element_type=jnp.float32)


def _ref_forward(model, inputs, length):
    N, U = inputs.shape
    D = model.d_model
    x = model.embedding[inputs.T].astype(jnp.float32)          # (U, N, D)
    t_idx = jnp.arange(U, dtype=jnp.int32)
    valid = (t_idx[:, None] < length[None, :])[..., None]      # (U, N, 1) bool

    def layer(xin, w_ih_t, w_hh_t, b):
        gx = (_bf16_mm(xin.reshape(U * N, D), w_ih_t) + b)
        gx = gx.astype(jnp.bfloat16).astype(jnp.float32).reshape(U, N, 4 * D)

        def step(carry, inp):
            h, c = carry
            gxt, vt = inp
            g = gxt + _bf16_mm(h, w_hh_t)
            i = jax.nn.sigmoid(g[:, 0 * D:1 * D])
            f = jax.nn.sigmoid(g[:, 1 * D:2 * D])
            gg = jnp.tanh(g[:, 2 * D:3 * D])
            o = jax.nn.sigmoid(g[:, 3 * D:4 * D])
            c_new = f * c + i * gg
            h_new = o * jnp.tanh(c_new)
            out = jnp.where(vt, h_new, 0.0)
            return (jnp.where(vt, h_new, h), jnp.where(vt, c_new, c)), out

        h0 = jnp.zeros((N, D), jnp.float32)
        (hT, cT), outs = lax.scan(step, (h0, h0), (gx, valid))
        return outs, hT, cT

    layer_in = x
    hs, cs = [], []
    for l in range(model.n_layers):
        layer_in, hT, cT = layer(layer_in, model.w_ih_t[l], model.w_hh_t[l], model.b_gate[l])
        hs.append(hT)
        cs.append(cT)

    y = layer_in
    if model.use_norm:
        mu = jnp.mean(y, axis=-1, keepdims=True)
        var = jnp.mean(jnp.square(y - mu), axis=-1, keepdims=True)
        y = (y - mu) * lax.rsqrt(var + 1e-5) * model.gamma + model.beta
    out = (_bf16_mm(y.reshape(U * N, D), model.w_out_t) + model.b_out)
    out = out.reshape(U, N, model.output_size)
    return out, jnp.stack(hs), jnp.stack(cs)


if __name__ == "__main__":
    d_model, output_size, vocab_size, n_layers = 32, 16, 10, 2
    N, U = 2, 8

    key = jax.random.PRNGKey(0)
    k_tok, _ = jax.random.split(key)
    inputs = jax.random.randint(k_tok, (N, U), minval=0, maxval=vocab_size, dtype=jnp.int32)
    length = jnp.array([U, 5], dtype=jnp.int32)

    # Single-chunk path (whole sequence in one grid step).
    model = BasePredictorPallas(d_model, output_size, vocab_size, n_layers,
                                use_norm=True, seed=0)
    result = model(inputs, length=length)
    out = jax.block_until_ready(result["out"])
    h_n, c_n = result["hidden"]

    ref_out, ref_h, ref_c = _ref_forward(model, inputs, length)
    assert out.shape == (U, N, output_size)
    assert jnp.allclose(out, ref_out, atol=2e-3, rtol=2e-3)
    assert jnp.allclose(h_n, ref_h, atol=2e-3, rtol=2e-3)
    assert jnp.allclose(c_n, ref_c, atol=2e-3, rtol=2e-3)

    # Multi-chunk path (state carried across grid steps + padded time steps masked).
    model_chunked = BasePredictorPallas(d_model, output_size, vocab_size, n_layers,
                                        use_norm=True, seed=0, chunk_steps=3)
    result_c = model_chunked(inputs, length=length)
    out_c = jax.block_until_ready(result_c["out"])
    h_c, c_c = result_c["hidden"]
    assert jnp.allclose(out_c, ref_out, atol=2e-3, rtol=2e-3)
    assert jnp.allclose(h_c, ref_h, atol=2e-3, rtol=2e-3)
    assert jnp.allclose(c_c, ref_c, atol=2e-3, rtol=2e-3)

    print("KERNEL_OK")
</pallas_src>

<mosaic_0001>
module attributes {stable_mosaic.version = 11 : i64} {
  func.func @_row_matmul_kernel(%arg0: i32, %arg1: i32, %arg2: memref<16x32xf32, #tpu.memory_space<vmem>>, %arg3: memref<1x32xf32, #tpu.memory_space<vmem>>, %arg4: memref<1x32xf32, #tpu.memory_space<vmem>>, %arg5: memref<32x128xbf16, #tpu.memory_space<vmem>>, %arg6: memref<1x128xf32, #tpu.memory_space<vmem>>, %arg7: memref<16x128xbf16, #tpu.memory_space<vmem>>) attributes {dimension_semantics = [#tpu.dimension_semantics<parallel>, #tpu.dimension_semantics<parallel>], iteration_bounds = array<i64: 1, 1>, scalar_prefetch = 0 : i64, scratch_operands = 0 : i64, tpu.core_type = #tpu.core_type<tc>, window_params = [{transform_indices = @transform_0, window_bounds = array<i64: 16, 32>}, {pipeline_mode = #tpu.pipeline_mode<synchronous>, transform_indices = @transform_1, window_bounds = array<i64: 1, 32>}, {pipeline_mode = #tpu.pipeline_mode<synchronous>, transform_indices = @transform_2, window_bounds = array<i64: 1, 32>}, {transform_indices = @transform_3, window_bounds = array<i64: 32, 128>}, {transform_indices = @transform_4, window_bounds = array<i64: 1, 128>}, {transform_indices = @transform_5, window_bounds = array<i64: 16, 128>}]} {
    %c0 = arith.constant 0 : index
    %c0_0 = arith.constant 0 : index
    %0 = vector.load %arg2[%c0, %c0_0] : memref<16x32xf32, #tpu.memory_space<vmem>>, vector<16x32xf32>
    %1 = arith.truncf %0 : vector<16x32xf32> to vector<16x32xbf16>
    %c0_1 = arith.constant 0 : index
    %c0_2 = arith.constant 0 : index
    %2 = vector.load %arg5[%c0_1, %c0_2] : memref<32x128xbf16, #tpu.memory_space<vmem>>, vector<32x128xbf16>
    %cst = arith.constant dense<0.000000e+00> : vector<16x128xf32>
    %3 = tpu.matmul %1, %2, %cst {dimension_numbers = #tpu.dot_dimension_numbers<[1], [0], [0], [1], [0, 0, 1, 1], [], []>} : vector<16x32xbf16>, vector<32x128xbf16>, vector<16x128xf32> -> vector<16x128xf32>
    %c0_3 = arith.constant 0 : index
    %c0_4 = arith.constant 0 : index
    %4 = vector.load %arg6[%c0_3, %c0_4] : memref<1x128xf32, #tpu.memory_space<vmem>>, vector<1x128xf32>
    %5 = vector.broadcast %4 : vector<1x128xf32> to vector<16x128xf32>
    %6 = arith.addf %3, %5 : vector<16x128xf32>
    %7 = arith.truncf %6 : vector<16x128xf32> to vector<16x128xbf16>
    %c0_5 = arith.constant 0 : index
    %c0_6 = arith.constant 0 : index
    %8 = vector.load %arg7[%c0_5, %c0_6] : memref<16x128xbf16, #tpu.memory_space<vmem>>, vector<16x128xbf16>
    tpu.vector_store %arg7[%c0_5, %c0_6], %7 {strides = array<i32>} : memref<16x128xbf16, #tpu.memory_space<vmem>>, vector<16x128xbf16>,
    return
  }
  func.func @transform_0(%arg0: i32, %arg1: i32) -> (i32, i32) {
    %c0_i32 = arith.constant 0 : i32
    %c0_i32_0 = arith.constant 0 : i32
    return %arg0, %c0_i32 : i32, i32
  }
  func.func @transform_1(%arg0: i32, %arg1: i32) -> (i32, i32) {
    %c0_i32 = arith.constant 0 : i32
    %c0_i32_0 = arith.constant 0 : i32
    %c0_i32_1 = arith.constant 0 : i32
    return %c0_i32, %c0_i32_0 : i32, i32
  }
  func.func @transform_2(%arg0: i32, %arg1: i32) -> (i32, i32) {
    %c0_i32 = arith.constant 0 : i32
    %c0_i32_0 = arith.constant 0 : i32
    %c0_i32_1 = arith.constant 0 : i32
    return %c0_i32, %c0_i32_0 : i32, i32
  }
  func.func @transform_3(%arg0: i32, %arg1: i32) -> (i32, i32) {
    %c0_i32 = arith.constant 0 : i32
    %c0_i32_0 = arith.constant 0 : i32
    return %c0_i32, %arg1 : i32, i32
  }
  func.func @transform_4(%arg0: i32, %arg1: i32) -> (i32, i32) {
    %c0_i32 = arith.constant 0 : i32
    %c0_i32_0 = arith.constant 0 : i32
    return %c0_i32, %arg1 : i32, i32
  }
  func.func @transform_5(%arg0: i32, %arg1: i32) -> (i32, i32) {
    %c0_i32 = arith.constant 0 : i32
    return %arg0, %arg1 : i32, i32
  }
}

</mosaic_0001>

<bundles_post_ra>
// kernel: tpu_custom_call.1
= control target key start
LH: loop header
LB: loop body
LE: loop exit
PB: predicated region body
PF: predicated region fallthrough
CT: control target
= control target key end

     0   :  { %10 = vsyncpa [#allocation3], 0  ;;  %s307_s0 = inlined_call_operand.hbm [shape: f32[16,32], index: 0, kind: input, shape index: {}]   ;;  %s308_s1 = inlined_call_operand.vmem [shape: f32[1,32], index: 1, kind: input, shape index: {}]   ;;  %s309_s2 = inlined_call_operand.vmem [shape: f32[1,32], index: 2, kind: input, shape index: {}]   ;;  %s310_s3 = inlined_call_operand.hbm [shape: bf16[32,128], index: 3, kind: input, shape index: {}]   ;;  %s311_s4 = inlined_call_operand.vmem [shape: f32[1,128], index: 4, kind: input, shape index: {}]   ;;  %s312_s5 = inlined_call_operand.hbm [shape: bf16[16,128], index: 5, kind: output, shape index: {}]  }
   0x1   :  { %11 = vsyncpa [#allocation6], 0 }
   0x2   :  { %12 = vsyncpa [#allocation4], 0  ;;  %s250_s18 = smov [#allocation2]  }
   0x3   :  { %s18_s19 = sshll.u32 %s250_s18, 4  ;;  %s19_s19 = int_to_ptr.vmem [resolvable:$true] %s18_s19 }
   0x4   :  { %s192_s20 = scalar_lea.vmem %s19_s19, 256  ;;  %p197_p1 = scmp.lt.s32.totalorder %s19_s19, %s19_s19 }
   0x5   :  { %p193_p0 = scmp.ne.s32.totalorder %s19_s19, %s192_s20  ;;  %p198_p2 = scmp.lt.s32.totalorder %s192_s20, %s192_s20 }
   0x7   :  { %p199_p3 = por %p198_p2, %p197_p1 }
   0x9   :  { %p200_p4 = pnand %p199_p3, %p193_p0 }
   0xb   :  { %203 = shalt.err (!%p200_p4)
}
   0xc   :  { %s251_s1 = smov 128   ;;  %s252_s2 = smov 8  }
   0xd   :  { %24 = dma.hbm_to_vmem [thread:$0]  %s307_s0, 256, %s19_s19, [#allocation3], %s251_s1, %s251_s1, %s252_s2  }
   0xe   :  { %s253_s23 = smov [#allocation5]  }
   0xf   :  { %s34_s24 = sshll.u32 %s253_s23, 4  ;;  %s35_s24 = int_to_ptr.vmem [resolvable:$true] %s34_s24 }
  0x10   :  { %s212_s25 = scalar_lea.vmem %s35_s24, 256  ;;  %p217_p6 = scmp.lt.s32.totalorder %s35_s24, %s35_s24 }
  0x11   :  { %p213_p5 = scmp.ne.s32.totalorder %s35_s24, %s212_s25  ;;  %p218_p7 = scmp.lt.s32.totalorder %s212_s25, %s212_s25 }
  0x13   :  { %p219_p8 = por %p218_p7, %p217_p6 }
  0x15   :  { %p220_p9 = pnand %p219_p8, %p213_p5 }
  0x17   :  { %223 = shalt.err (!%p220_p9)
}
  0x18   :  { %s254_s26 = smov 64   ;;  %s255_s27 = smov 4  }
  0x19   :  { %40 = dma.hbm_to_vmem [thread:$0]  %s310_s3, 256, %s35_s24, [#allocation6], %s254_s26, %s254_s26, %s255_s27  }
  0x1a   :  { %244 = dma.done.wait [#allocation3], 256  }
  0x1b   :  { %245 = vsyncadd [#allocation3], 4294967040 }
  0x1c   :  { %246 = dma.done.wait [#allocation6], 256  }
  0x1d   :  { %247 = vsyncadd [#allocation6], 4294967040  ;;  %v256_v0 = vmov 0.0   ;;  %vm257_vm0 = vmmov 0   ;;  %v182_v1 = vld [vmem:[#allocation5 + $0x8] sm:$0xff]   ;;  %v183_v2 = vld [vmem:[#allocation5] sm:$0xff]  }
  0x1e   :  { %165 = vmatprep.subr.bf16.mxu0 %v256_v0  ;;  %169 = vmatprep.mubr.msk.bf16.mxu0 %vm257_vm0, %v256_v0  ;;  %v50_v3 = vld [vmem:[#allocation2] sm:$0xff]  ;;  %v51_v4 = vld [vmem:[#allocation2 + $0x8] sm:$0xff]  ;;  %vm76_vm1 = vcmask 261120   ;;  %s258_s30 = smov [#allocation7]  }
  0x1f   :  { %166 = vmatpush3.bf16.msra.mxu0 %v182_v1  ;;  %v52_v5 = vpack.c.bf16 %v51_v4, %v50_v3  ;;  %v149_v7 = vld [vmem:[%s311_s4] ss:$0 sm:$0xff]  ;;  %s136_s6 = sshll.u32 %s258_s30, 4  ;;  %s137_s6 = int_to_ptr.vmem [resolvable:$true] %s136_s6 }
  0x20   :  { %167 = vmatprep.subr.bf16.mxu0 %v256_v0  ;;  %s224_s7 = scalar_lea.vmem %s137_s6, 128  ;;  %p229_p11 = scmp.lt.s32.totalorder %s137_s6, %s137_s6 }
  0x21   :  { %p225_p10 = scmp.ne.s32.totalorder %s137_s6, %s224_s7  ;;  %p230_p12 = scmp.lt.s32.totalorder %s224_s7, %s224_s7 }
  0x23   :  { %168 = vmatpush3.bf16.msra.mxu0 %v183_v2  ;;  %p231_p13 = por %p230_p12, %p229_p11 }
  0x25   :  { %p232_p0 = pnand %p231_p13, %p225_p10 }
  0x26   :  { %170 = vmatmul.mubr.msk.bf16.vlgmr.msra.gmra.mxu0 %vm76_vm1, %v52_v5 }
  0xe6   :  { %v114_v6 = vpop.f32.mrf.mxu0 }
  0xe7   :  { %v115_v10 = vadd.f32 %v149_v7, %v114_v6 }
  0xe8   :  { %v171_v8 = vpop.f32.mrf.mxu0 }
  0xea   :  { %v117_v9 = vpop.f32.mrf.mxu0 }
  0xeb   :  { %v118_v11 = vadd.f32 %v149_v7, %v117_v9 }
  0xec   :  { %v172_v12 = vpop.f32.mrf.mxu0 }
  0xed   :  { %v160_v13 = vpack.c.bf16 %v118_v11, %v115_v10 }
  0xef   :  { %161 = vst [vmem:[#allocation7] sm:$0xff] %v160_v13  }
  0xf0   :  { %235 = shalt.err (!%p232_p0)
}
  0xf1   :  { %142 = dma.vmem_to_hbm [thread:$0]  %s137_s6, 128, %s312_s5, [#allocation4], %s254_s26, %s254_s26, %s255_s27  }
  0xf2   :  { %248 = dma.done.wait [#allocation4], 128  }
  0xf3   :  { %249 = vsyncadd [#allocation4], 4294967168 }
  0xf4   :  { %146 = vsyncpa [#allocation3], 1 }
  0xf5   :  { %147 = vsyncpa [#allocation6], 1 }
  0xf6   :  { %148 = vsyncpa [#allocation4], 1 }

</bundles_post_ra>
